<compile_context>
chip_gen: v7x
topology: tpu7x:2x2x1
jax: 0.10.0
libtpu: 0.0.40
codegen_flags: <defaults>
</compile_context>

<pallas_src>
import functools

import jax
import jax.numpy as jnp
from jax.experimental import pallas as pl
from jax.experimental.pallas import tpu as pltpu


def _round_up(x, m):
    return (x + m - 1) // m * m


def _vmem_limit(est_bytes):
    """Leave the compiler's default scoped-VMEM limit alone unless the resident
    working set actually needs more; cap below v7x's 64 MiB physical VMEM
    (v5e/v6e have 128 MiB, so the cap is safe on every generation)."""
    need = int(est_bytes) + (4 << 20)          # margin for vregs / compiler scratch
    if need <= 16 * 1024 * 1024:
        return None
    return min(need, 60 * 1024 * 1024)


# ---------------------------------------------------------------------------
# Kernel 1: fused two-layer MLP  y = relu(relu(a @ W0 + b0) @ W1 + b1)
#   - bf16 operands / bf16 output, f32 MXU accumulation + f32 epilogue math
#   - both weights resident in VMEM (constant index_map), grid over M tiles only
#   - single K step -> no accumulator scratch, no pl.when init
# ---------------------------------------------------------------------------
def _mlp2_kernel(a_ref, w0_ref, b0_ref, w1_ref, b1_ref, o_ref):
    h = jnp.dot(a_ref[...], w0_ref[...], preferred_element_type=jnp.float32)
    h = jnp.maximum(h + b0_ref[...], 0.0)
    y = jnp.dot(h.astype(jnp.bfloat16), w1_ref[...], preferred_element_type=jnp.float32)
    y = jnp.maximum(y + b1_ref[...], 0.0)
    o_ref[...] = y.astype(o_ref.dtype)


def mlp2(a, l0, l1, *, tm_max=256):
    """a: (M, K) any float; returns PADDED (Mp, N1p) bf16 (caller slices valid region)."""
    M, K = a.shape
    K0p, N0p = l0["w"].shape
    N0p_b, N1p = l1["w"].shape
    assert N0p_b == N0p and K <= K0p

    tm = min(tm_max, _round_up(M, 16))          # 16-row multiples for bf16 sublane packing
    Mp = _round_up(M, tm)
    a_p = jnp.pad(a.astype(jnp.bfloat16), ((0, Mp - M), (0, K0p - K)))

    est = (2 * (tm * K0p + tm * N1p) * 2        # double-buffered A / out tiles (bf16)
           + 2 * (K0p * N0p + N0p * N1p) * 2    # resident weights (bf16)
           + tm * (N0p + N1p) * 4)              # f32 intermediates

    out = pl.pallas_call(
        _mlp2_kernel,
        out_shape=jax.ShapeDtypeStruct((Mp, N1p), jnp.bfloat16),
        grid_spec=pltpu.PrefetchScalarGridSpec(
            num_scalar_prefetch=0,
            grid=(Mp // tm,),
            in_specs=[
                pl.BlockSpec((tm, K0p), lambda i: (i, 0)),
                pl.BlockSpec((K0p, N0p), lambda i: (0, 0)),   # W0 resident
                pl.BlockSpec((1, N0p), lambda i: (0, 0)),     # b0 resident
                pl.BlockSpec((N0p, N1p), lambda i: (0, 0)),   # W1 resident
                pl.BlockSpec((1, N1p), lambda i: (0, 0)),     # b1 resident
            ],
            out_specs=pl.BlockSpec((tm, N1p), lambda i: (i, 0)),
        ),
        compiler_params=pltpu.CompilerParams(
            dimension_semantics=("parallel",),
            vmem_limit_bytes=_vmem_limit(est)),
    )(a_p, l0["w"], l0["b"], l1["w"], l1["b"])
    return out


# ---------------------------------------------------------------------------
# Kernel 2: fused (one-hot MXU segment-sum pooling  ->  two-layer MLP = net2)
#   pooled = onehot_s @ new_s + onehot_o @ new_o            (scatter-add on the MXU)
#   out    = relu(relu(rs * (pooled @ W2) + b2) @ W3 + b3)  (rs = 1/count for 'avg')
# new_s / new_o and all net2 weights stay resident in VMEM; grid over O tiles only.
# ---------------------------------------------------------------------------
def _pool_mlp2_kernel(ss_ref, so_ref, ys_ref, yo_ref, rs_ref,
                      w0_ref, b0_ref, w1_ref, b1_ref, o_ref):
    pooled = jnp.dot(ss_ref[...], ys_ref[...], preferred_element_type=jnp.float32)
    pooled = pooled + jnp.dot(so_ref[...], yo_ref[...], preferred_element_type=jnp.float32)
    # 'avg' pooling: per-row 1/count commutes with the right-multiplication, so it is
    # fused as a row scale in this epilogue instead of a separate divide pass.
    h = jnp.dot(pooled.astype(jnp.bfloat16), w0_ref[...], preferred_element_type=jnp.float32)
    h = jnp.maximum(h * rs_ref[...] + b0_ref[...], 0.0)
    y = jnp.dot(h.astype(jnp.bfloat16), w1_ref[...], preferred_element_type=jnp.float32)
    y = jnp.maximum(y + b1_ref[...], 0.0)
    o_ref[...] = y.astype(o_ref.dtype)


def pool_mlp2(s_idx, o_idx, num_objs, ys_p, yo_p, l0, l1, *, pooling="avg", tm_max=256):
    """ys_p/yo_p: (Tp, Hp) bf16 (rows beyond the real T are masked out by the one-hot).
    Returns PADDED (Op, N1p) bf16."""
    T = s_idx.shape[0]
    Tp, Hp = ys_p.shape
    assert yo_p.shape == (Tp, Hp)
    Hp_w, N0p = l0["w"].shape
    N0p_b, N1p = l1["w"].shape
    assert Hp_w == Hp and N0p_b == N0p

    tm = min(tm_max, _round_up(num_objs, 16))
    Op = _round_up(num_objs, tm)

    # One-hot segment matrices (exact 0/1 in bf16); padded edges use index -1 -> all zero.
    obj_ids = jnp.arange(Op, dtype=jnp.int32)[:, None]
    s_pad = jnp.pad(s_idx.astype(jnp.int32), (0, Tp - T), constant_values=-1)[None, :]
    o_pad = jnp.pad(o_idx.astype(jnp.int32), (0, Tp - T), constant_values=-1)[None, :]
    onehot_s = (s_pad == obj_ids).astype(jnp.bfloat16)      # (Op, Tp)
    onehot_o = (o_pad == obj_ids).astype(jnp.bfloat16)      # (Op, Tp)

    if pooling == "avg":
        cnt = (jnp.sum(onehot_s.astype(jnp.float32), axis=1)
               + jnp.sum(onehot_o.astype(jnp.float32), axis=1))
        rs = (1.0 / jnp.maximum(cnt, 1.0)).reshape(Op, 1)
    else:
        rs = jnp.ones((Op, 1), jnp.float32)

    # TODO(synk): for very large edge counts the resident new_s/new_o slabs would need a
    # T-tiled (accumulator) variant; fine for the VMEM budgets of these model sizes.
    est = (2 * (2 * tm * Tp + tm * N1p) * 2     # double-buffered one-hot / out tiles
           + 2 * (2 * Tp * Hp) * 2              # resident new_s / new_o (bf16)
           + 2 * (Hp * N0p + N0p * N1p) * 2     # resident weights (bf16)
           + tm * (Hp + N0p + N1p) * 4          # f32 intermediates
           + 2 * tm * 4 * 2)                    # row scale

    out = pl.pallas_call(
        _pool_mlp2_kernel,
        out_shape=jax.ShapeDtypeStruct((Op, N1p), jnp.bfloat16),
        grid_spec=pltpu.PrefetchScalarGridSpec(
            num_scalar_prefetch=0,
            grid=(Op // tm,),
            in_specs=[
                pl.BlockSpec((tm, Tp), lambda i: (i, 0)),     # one-hot (subjects)
                pl.BlockSpec((tm, Tp), lambda i: (i, 0)),     # one-hot (objects)
                pl.BlockSpec((Tp, Hp), lambda i: (0, 0)),     # new_s resident
                pl.BlockSpec((Tp, Hp), lambda i: (0, 0)),     # new_o resident
                pl.BlockSpec((tm, 1), lambda i: (i, 0)),      # 1/count row scale
                pl.BlockSpec((Hp, N0p), lambda i: (0, 0)),    # W2 resident
                pl.BlockSpec((1, N0p), lambda i: (0, 0)),     # b2 resident
                pl.BlockSpec((N0p, N1p), lambda i: (0, 0)),   # W3 resident
                pl.BlockSpec((1, N1p), lambda i: (0, 0)),     # b3 resident
            ],
            out_specs=pl.BlockSpec((tm, N1p), lambda i: (i, 0)),
        ),
        compiler_params=pltpu.CompilerParams(
            dimension_semantics=("parallel",),
            vmem_limit_bytes=_vmem_limit(est)),
    )(onehot_s, onehot_o, ys_p, yo_p, rs, l0["w"], l0["b"], l1["w"], l1["b"])
    return out


# ---------------- parameter init (deterministic, synthetic) ----------------
# Weights are padded to 128-multiples and cast to bf16 ONCE here; f32 unpadded copies
# are kept only for the pure-JAX reference check.

def _pack_linear(key, din, dout):
    k1, k2 = jax.random.split(key)
    w = jnp.sqrt(2.0 / din) * jax.random.normal(k1, (din, dout), jnp.float32)  # kaiming-ish
    b = 0.05 * jax.random.normal(k2, (dout,), jnp.float32)
    dinp, doutp = _round_up(din, 128), _round_up(dout, 128)
    return {
        "w": jnp.pad(w, ((0, dinp - din), (0, doutp - dout))).astype(jnp.bfloat16),
        "b": jnp.pad(b, (0, doutp - dout)).reshape(1, doutp),
        "w_ref": w, "b_ref": b,
    }


def init_graph_triple_conv(key, input_dim, hidden_dim, output_dim):
    ks = jax.random.split(key, 4)
    return {
        "net1_0": _pack_linear(ks[0], 3 * input_dim, hidden_dim),
        "net1_1": _pack_linear(ks[1], hidden_dim, 2 * hidden_dim + output_dim),
        "net2_0": _pack_linear(ks[2], hidden_dim, hidden_dim),
        "net2_1": _pack_linear(ks[3], hidden_dim, output_dim),
    }


def init_graph_triple_conv_net(key, input_dim, num_layers, hidden_dim):
    keys = jax.random.split(key, num_layers)
    # output_dim=None in the PyTorch module -> output_dim = input_dim
    return [init_graph_triple_conv(k, input_dim, hidden_dim, input_dim) for k in keys]


# ---------------- forward (mirrors GraphTripleConv / GraphTripleConvNet) ----------------

def graph_triple_conv_forward(p, obj_vecs, pred_vecs, edges, *,
                              hidden_dim, output_dim, pooling="avg"):
    H, Dout = hidden_dim, output_dim
    O, T = obj_vecs.shape[0], pred_vecs.shape[0]
    s_idx = edges[:, 0]
    o_idx = edges[:, 1]

    obj_b = obj_vecs.astype(jnp.bfloat16)
    pred_b = pred_vecs.astype(jnp.bfloat16)

    # TODO(synk): per-edge gather + [s,p,o] concat kept as XLA glue; a pl.Element
    # row-gather BlockSpec would force one-row grid steps and underfill the MXU here.
    cur_t = jnp.concatenate(
        [jnp.take(obj_b, s_idx, axis=0), pred_b, jnp.take(obj_b, o_idx, axis=0)], axis=1)

    # net1 pair, fused into one Pallas kernel (padded bf16 output).
    new_t_p = mlp2(cur_t, p["net1_0"], p["net1_1"])

    Hp = p["net2_0"]["w"].shape[0]
    new_p = new_t_p[:T, H:H + Dout]
    # Padded rows (>= T) of these slabs are zeroed out by the one-hot columns (index -1),
    # so only column padding to the kernel's Hp is needed.
    new_s_p = jnp.pad(new_t_p[:, :H], ((0, 0), (0, Hp - H)))
    new_o_p = jnp.pad(new_t_p[:, H + Dout:2 * H + Dout], ((0, 0), (0, Hp - H)))

    # MXU segment-sum pooling + net2 pair, fused into one Pallas kernel.
    new_obj_p = pool_mlp2(s_idx, o_idx, O, new_s_p, new_o_p,
                          p["net2_0"], p["net2_1"], pooling=pooling)
    return new_obj_p[:O, :Dout], new_p


@functools.partial(jax.jit, static_argnames=("hidden_dim", "output_dim", "pooling"))
def graph_triple_conv_net_forward(params, obj_vecs, pred_vecs, edges, *,
                                  hidden_dim, output_dim, pooling="avg"):
    obj_vecs = obj_vecs.astype(jnp.bfloat16)
    pred_vecs = pred_vecs.astype(jnp.bfloat16)
    for p in params:
        obj_vecs, pred_vecs = graph_triple_conv_forward(
            p, obj_vecs, pred_vecs, edges,
            hidden_dim=hidden_dim, output_dim=output_dim, pooling=pooling)
    return obj_vecs, pred_vecs


# ---------------- pure-JAX f32 reference (for a loose numerics check) ----------------

def reference_forward(params, obj_vecs, pred_vecs, edges, *,
                      hidden_dim, output_dim, pooling="avg"):
    H, Dout = hidden_dim, output_dim
    s_idx, o_idx = edges[:, 0], edges[:, 1]
    O = obj_vecs.shape[0]

    def lin(x, l):
        return x @ l["w_ref"] + l["b_ref"]

    for p in params:
        cur_t = jnp.concatenate([obj_vecs[s_idx], pred_vecs, obj_vecs[o_idx]], axis=1)
        new_t = jax.nn.relu(lin(jax.nn.relu(lin(cur_t, p["net1_0"])), p["net1_1"]))
        new_s = new_t[:, :H]
        new_p = new_t[:, H:H + Dout]
        new_o = new_t[:, H + Dout:2 * H + Dout]
        pooled = jnp.zeros((O, H), jnp.float32).at[s_idx].add(new_s).at[o_idx].add(new_o)
        if pooling == "avg":
            cnt = jnp.zeros((O,), jnp.float32).at[s_idx].add(1.0).at[o_idx].add(1.0)
            pooled = pooled / jnp.maximum(cnt, 1.0)[:, None]
        obj_vecs = jax.nn.relu(lin(jax.nn.relu(lin(pooled, p["net2_0"])), p["net2_1"]))
        pred_vecs = new_p
    return obj_vecs, pred_vecs


if __name__ == "__main__":
    key = jax.random.PRNGKey(0)
    k_params, k_obj, k_pred, k_edges = jax.random.split(key, 4)

    # GraphTripleConvNet(input_dim=32, num_layers=2, hidden_dim=64,
    #                    pooling='avg', mlp_normalization='none')
    input_dim, hidden_dim, num_layers = 32, 64, 2
    num_objs, num_triples = 8, 8

    params = init_graph_triple_conv_net(k_params, input_dim, num_layers, hidden_dim)
    obj_vecs = jax.random.normal(k_obj, (num_objs, input_dim), jnp.float32)
    pred_vecs = jax.random.normal(k_pred, (num_triples, input_dim), jnp.float32)
    edges = jax.random.randint(k_edges, (num_triples, 2), 0, num_objs, jnp.int32)

    new_obj, new_pred = graph_triple_conv_net_forward(
        params, obj_vecs, pred_vecs, edges,
        hidden_dim=hidden_dim, output_dim=input_dim, pooling="avg")
    new_obj = jax.block_until_ready(new_obj)
    new_pred = jax.block_until_ready(new_pred)

    assert new_obj.shape == (num_objs, input_dim), new_obj.shape
    assert new_pred.shape == (num_triples, input_dim), new_pred.shape
    assert bool(jnp.all(jnp.isfinite(new_obj.astype(jnp.float32))))
    assert bool(jnp.all(jnp.isfinite(new_pred.astype(jnp.float32))))

    # Loose correctness check vs. pure-f32 reference (bf16 MXU numerics -> wide tolerance).
    ref_obj, ref_pred = reference_forward(
        params, obj_vecs, pred_vecs, edges,
        hidden_dim=hidden_dim, output_dim=input_dim, pooling="avg")
    for got, ref in ((new_obj, ref_obj), (new_pred, ref_pred)):
        err = float(jnp.max(jnp.abs(got.astype(jnp.float32) - ref)))
        tol = 0.08 * float(jnp.max(jnp.abs(ref))) + 0.08
        assert err <= tol, (err, tol)

    print("KERNEL_OK")
</pallas_src>

<mosaic_0001>
module attributes {stable_mosaic.version = 11 : i64} {
  func.func @_mlp2_kernel(%arg0: i32, %arg1: memref<16x128xbf16, #tpu.memory_space<vmem>>, %arg2: memref<128x128xbf16, #tpu.memory_space<vmem>>, %arg3: memref<1x128xf32, #tpu.memory_space<vmem>>, %arg4: memref<128x256xbf16, #tpu.memory_space<vmem>>, %arg5: memref<1x256xf32, #tpu.memory_space<vmem>>, %arg6: memref<16x256xbf16, #tpu.memory_space<vmem>>) attributes {dimension_semantics = [#tpu.dimension_semantics<parallel>], iteration_bounds = array<i64: 1>, scalar_prefetch = 0 : i64, scratch_operands = 0 : i64, tpu.core_type = #tpu.core_type<tc>, window_params = [{transform_indices = @transform_0, window_bounds = array<i64: 16, 128>}, {pipeline_mode = #tpu.pipeline_mode<synchronous>, transform_indices = @transform_1, window_bounds = array<i64: 128, 128>}, {pipeline_mode = #tpu.pipeline_mode<synchronous>, transform_indices = @transform_2, window_bounds = array<i64: 1, 128>}, {pipeline_mode = #tpu.pipeline_mode<synchronous>, transform_indices = @transform_3, window_bounds = array<i64: 128, 256>}, {pipeline_mode = #tpu.pipeline_mode<synchronous>, transform_indices = @transform_4, window_bounds = array<i64: 1, 256>}, {transform_indices = @transform_5, window_bounds = array<i64: 16, 256>}]} {
    %c0 = arith.constant 0 : index
    %c0_0 = arith.constant 0 : index
    %0 = vector.load %arg1[%c0, %c0_0] : memref<16x128xbf16, #tpu.memory_space<vmem>>, vector<16x128xbf16>
    %c0_1 = arith.constant 0 : index
    %c0_2 = arith.constant 0 : index
    %1 = vector.load %arg2[%c0_1, %c0_2] : memref<128x128xbf16, #tpu.memory_space<vmem>>, vector<128x128xbf16>
    %cst = arith.constant dense<0.000000e+00> : vector<16x128xf32>
    %2 = tpu.matmul %0, %1, %cst {dimension_numbers = #tpu.dot_dimension_numbers<[1], [0], [0], [1], [0, 0, 1, 1], [], []>} : vector<16x128xbf16>, vector<128x128xbf16>, vector<16x128xf32> -> vector<16x128xf32>
    %c0_3 = arith.constant 0 : index
    %c0_4 = arith.constant 0 : index
    %3 = vector.load %arg3[%c0_3, %c0_4] : memref<1x128xf32, #tpu.memory_space<vmem>>, vector<1x128xf32>
    %4 = vector.broadcast %3 : vector<1x128xf32> to vector<16x128xf32>
    %5 = arith.addf %2, %4 : vector<16x128xf32>
    %cst_5 = arith.constant 0.000000e+00 : f32
    %6 = vector.broadcast %cst_5 : f32 to vector<16x128xf32>
    %7 = arith.maximumf %5, %6 : vector<16x128xf32>
    %8 = arith.truncf %7 : vector<16x128xf32> to vector<16x128xbf16>
    %c0_6 = arith.constant 0 : index
    %c0_7 = arith.constant 0 : index
    %9 = vector.load %arg4[%c0_6, %c0_7] : memref<128x256xbf16, #tpu.memory_space<vmem>>, vector<128x256xbf16>
    %cst_8 = arith.constant dense<0.000000e+00> : vector<16x256xf32>
    %10 = tpu.matmul %8, %9, %cst_8 {dimension_numbers = #tpu.dot_dimension_numbers<[1], [0], [0], [1], [0, 0, 1, 1], [], []>} : vector<16x128xbf16>, vector<128x256xbf16>, vector<16x256xf32> -> vector<16x256xf32>
    %c0_9 = arith.constant 0 : index
    %c0_10 = arith.constant 0 : index
    %11 = vector.load %arg5[%c0_9, %c0_10] : memref<1x256xf32, #tpu.memory_space<vmem>>, vector<1x256xf32>
    %12 = vector.broadcast %11 : vector<1x256xf32> to vector<16x256xf32>
    %13 = arith.addf %10, %12 : vector<16x256xf32>
    %cst_11 = arith.constant 0.000000e+00 : f32
    %14 = vector.broadcast %cst_11 : f32 to vector<16x256xf32>
    %15 = arith.maximumf %13, %14 : vector<16x256xf32>
    %16 = arith.truncf %15 : vector<16x256xf32> to vector<16x256xbf16>
    %c0_12 = arith.constant 0 : index
    %c0_13 = arith.constant 0 : index
    %17 = vector.load %arg6[%c0_12, %c0_13] : memref<16x256xbf16, #tpu.memory_space<vmem>>, vector<16x256xbf16>
    tpu.vector_store %arg6[%c0_12, %c0_13], %16 {strides = array<i32>} : memref<16x256xbf16, #tpu.memory_space<vmem>>, vector<16x256xbf16>,
    return
  }
  func.func @transform_0(%arg0: i32) -> (i32, i32) {
    %c0_i32 = arith.constant 0 : i32
    %c0_i32_0 = arith.constant 0 : i32
    return %arg0, %c0_i32 : i32, i32
  }
  func.func @transform_1(%arg0: i32) -> (i32, i32) {
    %c0_i32 = arith.constant 0 : i32
    %c0_i32_0 = arith.constant 0 : i32
    %c0_i32_1 = arith.constant 0 : i32
    return %c0_i32, %c0_i32_0 : i32, i32
  }
  func.func @transform_2(%arg0: i32) -> (i32, i32) {
    %c0_i32 = arith.constant 0 : i32
    %c0_i32_0 = arith.constant 0 : i32
    %c0_i32_1 = arith.constant 0 : i32
    return %c0_i32, %c0_i32_0 : i32, i32
  }
  func.func @transform_3(%arg0: i32) -> (i32, i32) {
    %c0_i32 = arith.constant 0 : i32
    %c0_i32_0 = arith.constant 0 : i32
    %c0_i32_1 = arith.constant 0 : i32
    return %c0_i32, %c0_i32_0 : i32, i32
  }
  func.func @transform_4(%arg0: i32) -> (i32, i32) {
    %c0_i32 = arith.constant 0 : i32
    %c0_i32_0 = arith.constant 0 : i32
    %c0_i32_1 = arith.constant 0 : i32
    return %c0_i32, %c0_i32_0 : i32, i32
  }
  func.func @transform_5(%arg0: i32) -> (i32, i32) {
    %c0_i32 = arith.constant 0 : i32
    %c0_i32_0 = arith.constant 0 : i32
    return %arg0, %c0_i32 : i32, i32
  }
}

module attributes {stable_mosaic.version = 11 : i64} {
  func.func @_pool_mlp2_kernel(%arg0: i32, %arg1: memref<16x16xbf16, #tpu.memory_space<vmem>>, %arg2: memref<16x16xbf16, #tpu.memory_space<vmem>>, %arg3: memref<16x128xbf16, #tpu.memory_space<vmem>>, %arg4: memref<16x128xbf16, #tpu.memory_space<vmem>>, %arg5: memref<16x1xf32, #tpu.memory_space<vmem>>, %arg6: memref<128x128xbf16, #tpu.memory_space<vmem>>, %arg7: memref<1x128xf32, #tpu.memory_space<vmem>>, %arg8: memref<128x128xbf16, #tpu.memory_space<vmem>>, %arg9: memref<1x128xf32, #tpu.memory_space<vmem>>, %arg10: memref<16x128xbf16, #tpu.memory_space<vmem>>) attributes {dimension_semantics = [#tpu.dimension_semantics<parallel>], iteration_bounds = array<i64: 1>, scalar_prefetch = 0 : i64, scratch_operands = 0 : i64, tpu.core_type = #tpu.core_type<tc>, window_params = [{transform_indices = @transform_0, window_bounds = array<i64: 16, 16>}, {transform_indices = @transform_1, window_bounds = array<i64: 16, 16>}, {pipeline_mode = #tpu.pipeline_mode<synchronous>, transform_indices = @transform_2, window_bounds = array<i64: 16, 128>}, {pipeline_mode = #tpu.pipeline_mode<synchronous>, transform_indices = @transform_3, window_bounds = array<i64: 16, 128>}, {transform_indices = @transform_4, window_bounds = array<i64: 16, 1>}, {pipeline_mode = #tpu.pipeline_mode<synchronous>, transform_indices = @transform_5, window_bounds = array<i64: 128, 128>}, {pipeline_mode = #tpu.pipeline_mode<synchronous>, transform_indices = @transform_6, window_bounds = array<i64: 1, 128>}, {pipeline_mode = #tpu.pipeline_mode<synchronous>, transform_indices = @transform_7, window_bounds = array<i64: 128, 128>}, {pipeline_mode = #tpu.pipeline_mode<synchronous>, transform_indices = @transform_8, window_bounds = array<i64: 1, 128>}, {transform_indices = @transform_9, window_bounds = array<i64: 16, 128>}]} {
    %c0 = arith.constant 0 : index
    %c0_0 = arith.constant 0 : index
    %0 = vector.load %arg1[%c0, %c0_0] : memref<16x16xbf16, #tpu.memory_space<vmem>>, vector<16x16xbf16>
    %c0_1 = arith.constant 0 : index
    %c0_2 = arith.constant 0 : index
    %1 = vector.load %arg3[%c0_1, %c0_2] : memref<16x128xbf16, #tpu.memory_space<vmem>>, vector<16x128xbf16>
    %cst = arith.constant dense<0.000000e+00> : vector<16x128xf32>
    %2 = tpu.matmul %0, %1, %cst {dimension_numbers = #tpu.dot_dimension_numbers<[1], [0], [0], [1], [0, 0, 1, 1], [], []>} : vector<16x16xbf16>, vector<16x128xbf16>, vector<16x128xf32> -> vector<16x128xf32>
    %c0_3 = arith.constant 0 : index
    %c0_4 = arith.constant 0 : index
    %3 = vector.load %arg2[%c0_3, %c0_4] : memref<16x16xbf16, #tpu.memory_space<vmem>>, vector<16x16xbf16>
    %c0_5 = arith.constant 0 : index
    %c0_6 = arith.constant 0 : index
    %4 = vector.load %arg4[%c0_5, %c0_6] : memref<16x128xbf16, #tpu.memory_space<vmem>>, vector<16x128xbf16>
    %cst_7 = arith.constant dense<0.000000e+00> : vector<16x128xf32>
    %5 = tpu.matmul %3, %4, %cst_7 {dimension_numbers = #tpu.dot_dimension_numbers<[1], [0], [0], [1], [0, 0, 1, 1], [], []>} : vector<16x16xbf16>, vector<16x128xbf16>, vector<16x128xf32> -> vector<16x128xf32>
    %6 = arith.addf %2, %5 : vector<16x128xf32>
    %7 = arith.truncf %6 : vector<16x128xf32> to vector<16x128xbf16>
    %c0_8 = arith.constant 0 : index
    %c0_9 = arith.constant 0 : index
    %8 = vector.load %arg6[%c0_8, %c0_9] : memref<128x128xbf16, #tpu.memory_space<vmem>>, vector<128x128xbf16>
    %cst_10 = arith.constant dense<0.000000e+00> : vector<16x128xf32>
    %9 = tpu.matmul %7, %8, %cst_10 {dimension_numbers = #tpu.dot_dimension_numbers<[1], [0], [0], [1], [0, 0, 1, 1], [], []>} : vector<16x128xbf16>, vector<128x128xbf16>, vector<16x128xf32> -> vector<16x128xf32>
    %c0_11 = arith.constant 0 : index
    %c0_12 = arith.constant 0 : index
    %10 = vector.load %arg5[%c0_11, %c0_12] : memref<16x1xf32, #tpu.memory_space<vmem>>, vector<16x1xf32>
    %11 = vector.broadcast %10 : vector<16x1xf32> to vector<16x128xf32>
    %12 = arith.mulf %9, %11 : vector<16x128xf32>
    %c0_13 = arith.constant 0 : index
    %c0_14 = arith.constant 0 : index
    %13 = vector.load %arg7[%c0_13, %c0_14] : memref<1x128xf32, #tpu.memory_space<vmem>>, vector<1x128xf32>
    %14 = vector.broadcast %13 : vector<1x128xf32> to vector<16x128xf32>
    %15 = arith.addf %12, %14 : vector<16x128xf32>
    %cst_15 = arith.constant 0.000000e+00 : f32
    %16 = vector.broadcast %cst_15 : f32 to vector<16x128xf32>
    %17 = arith.maximumf %15, %16 : vector<16x128xf32>
    %18 = arith.truncf %17 : vector<16x128xf32> to vector<16x128xbf16>
    %c0_16 = arith.constant 0 : index
    %c0_17 = arith.constant 0 : index
    %19 = vector.load %arg8[%c0_16, %c0_17] : memref<128x128xbf16, #tpu.memory_space<vmem>>, vector<128x128xbf16>
    %cst_18 = arith.constant dense<0.000000e+00> : vector<16x128xf32>
    %20 = tpu.matmul %18, %19, %cst_18 {dimension_numbers = #tpu.dot_dimension_numbers<[1], [0], [0], [1], [0, 0, 1, 1], [], []>} : vector<16x128xbf16>, vector<128x128xbf16>, vector<16x128xf32> -> vector<16x128xf32>
    %c0_19 = arith.constant 0 : index
    %c0_20 = arith.constant 0 : index
    %21 = vector.load %arg9[%c0_19, %c0_20] : memref<1x128xf32, #tpu.memory_space<vmem>>, vector<1x128xf32>
    %22 = vector.broadcast %21 : vector<1x128xf32> to vector<16x128xf32>
    %23 = arith.addf %20, %22 : vector<16x128xf32>
    %cst_21 = arith.constant 0.000000e+00 : f32
    %24 = vector.broadcast %cst_21 : f32 to vector<16x128xf32>
    %25 = arith.maximumf %23, %24 : vector<16x128xf32>
    %26 = arith.truncf %25 : vector<16x128xf32> to vector<16x128xbf16>
    %c0_22 = arith.constant 0 : index
    %c0_23 = arith.constant 0 : index
    %27 = vector.load %arg10[%c0_22, %c0_23] : memref<16x128xbf16, #tpu.memory_space<vmem>>, vector<16x128xbf16>
    tpu.vector_store %arg10[%c0_22, %c0_23], %26 {strides = array<i32>} : memref<16x128xbf16, #tpu.memory_space<vmem>>, vector<16x128xbf16>,
    return
  }
  func.func @transform_0(%arg0: i32) -> (i32, i32) {
    %c0_i32 = arith.constant 0 : i32
    %c0_i32_0 = arith.constant 0 : i32
    return %arg0, %c0_i32 : i32, i32
  }
  func.func @transform_1(%arg0: i32) -> (i32, i32) {
    %c0_i32 = arith.constant 0 : i32
    %c0_i32_0 = arith.constant 0 : i32
    return %arg0, %c0_i32 : i32, i32
  }
  func.func @transform_2(%arg0: i32) -> (i32, i32) {
    %c0_i32 = arith.constant 0 : i32
    %c0_i32_0 = arith.constant 0 : i32
    %c0_i32_1 = arith.constant 0 : i32
    return %c0_i32, %c0_i32_0 : i32, i32
  }
  func.func @transform_3(%arg0: i32) -> (i32, i32) {
    %c0_i32 = arith.constant 0 : i32
    %c0_i32_0 = arith.constant 0 : i32
    %c0_i32_1 = arith.constant 0 : i32
    return %c0_i32, %c0_i32_0 : i32, i32
  }
  func.func @transform_4(%arg0: i32) -> (i32, i32) {
    %c0_i32 = arith.constant 0 : i32
    %c0_i32_0 = arith.constant 0 : i32
    return %arg0, %c0_i32 : i32, i32
  }
  func.func @transform_5(%arg0: i32) -> (i32, i32) {
    %c0_i32 = arith.constant 0 : i32
    %c0_i32_0 = arith.constant 0 : i32
    %c0_i32_1 = arith.constant 0 : i32
    return %c0_i32, %c0_i32_0 : i32, i32
  }
  func.func @transform_6(%arg0: i32) -> (i32, i32) {
    %c0_i32 = arith.constant 0 : i32
    %c0_i32_0 = arith.constant 0 : i32
    %c0_i32_1 = arith.constant 0 : i32
    return %c0_i32, %c0_i32_0 : i32, i32
  }
  func.func @transform_7(%arg0: i32) -> (i32, i32) {
    %c0_i32 = arith.constant 0 : i32
    %c0_i32_0 = arith.constant 0 : i32
    %c0_i32_1 = arith.constant 0 : i32
    return %c0_i32, %c0_i32_0 : i32, i32
  }
  func.func @transform_8(%arg0: i32) -> (i32, i32) {
    %c0_i32 = arith.constant 0 : i32
    %c0_i32_0 = arith.constant 0 : i32
    %c0_i32_1 = arith.constant 0 : i32
    return %c0_i32, %c0_i32_0 : i32, i32
  }
  func.func @transform_9(%arg0: i32) -> (i32, i32) {
    %c0_i32 = arith.constant 0 : i32
    %c0_i32_0 = arith.constant 0 : i32
    return %arg0, %c0_i32 : i32, i32
  }
}

</mosaic_0001>

<bundles_post_ra>
// kernel: graph_triple_conv_net_forward.5
= control target key start
LH: loop header
LB: loop body
LE: loop exit
PB: predicated region body
PF: predicated region fallthrough
CT: control target
= control target key end

     0   :  { %v545_v0 = vmov 0.0   ;;  %vm546_vm0 = vmmov 0   ;;  %vm52_vm1 = vcmask 130048   ;;  %v547_v13 = vmov 0   ;;  %s699_s3 = inlined_call_operand.vmem [shape: bf16[16,128], index: 3, kind: input, shape index: {}]   ;;  %s700_s2 = inlined_call_operand.vmem [shape: bf16[16,128], index: 2, kind: input, shape index: {}]   ;;  %s701_s1 = inlined_call_operand.vmem [shape: bf16[16,16], index: 1, kind: input, shape index: {}]   ;;  %s702_s0 = inlined_call_operand.vmem [shape: bf16[16,16], index: 0, kind: input, shape index: {}]   ;;  %s703_s5 = inlined_call_operand.vmem [shape: bf16[128,128], index: 5, kind: input, shape index: {}]   ;;  %s704_s4 = inlined_call_operand.vmem [shape: f32[16,1], index: 4, kind: input, shape index: {}]   ;;  %s705_s7 = inlined_call_operand.vmem [shape: bf16[128,128], index: 7, kind: input, shape index: {}]   ;;  %s706_s6 = inlined_call_operand.vmem [shape: f32[1,128], index: 6, kind: input, shape index: {}]   ;;  %s707_s8 = inlined_call_operand.vmem [shape: f32[1,128], index: 8, kind: input, shape index: {}]   ;;  %s708_s9 = inlined_call_operand.vmem [shape: bf16[16,128], index: 9, kind: output, shape index: {}]  }
   0x1   :  { %467 = vmatprep.subr.bf16.mxu1 %v545_v0  ;;  %473 = vmatprep.subr.bf16.mxu0 %v545_v0  ;;  %v525_v1 = vld [vmem:[%s699_s3] sm:$0xff]   ;;  %v530_v6 = vld [vmem:[%s703_s5 + $0x8] sm:$0xff]   ;;  %v531_v7 = vld [vmem:[%s703_s5 + $0x10] sm:$0xff]  }
   0x2   :  { %v526_v2 = vld [vmem:[%s700_s2] sm:$0xff]   ;;  %469 = vmatprep.mubr.msk.bf16.mxu1 %vm546_vm0, %v545_v0  ;;  %475 = vmatprep.mubr.msk.bf16.mxu0 %vm546_vm0, %v545_v0  ;;  %v532_v8 = vld [vmem:[%s703_s5 + $0x18] sm:$0xff]   ;;  %v534_v10 = vld [vmem:[%s703_s5 + $0x28] sm:$0xff]  }
   0x3   :  { %468 = vmatpush3.bf16.msra.mxu1 %v525_v1  ;;  %v527_v3 = vld [vmem:[%s701_s1] sm:$0xff]   ;;  %474 = vmatpush3.bf16.msra.mxu0 %v526_v2  ;;  %v535_v11 = vld [vmem:[%s703_s5 + $0x30] sm:$0xff]   ;;  %v536_v12 = vld [vmem:[%s703_s5 + $0x38] sm:$0xff]  }
   0x4   :  { %v528_v4 = vld [vmem:[%s702_s0] sm:$0xff]   ;;  %479 = vmatprep.subr.bf16.mxu1 %v545_v0  ;;  %499 = vmatprep.subr.bf16.mxu0 %v545_v0  ;;  %v259_v16 = vld [vmem:[%s704_s4 + $0x8] sm:$0xff]  ;;  %v539_v18 = vld [vmem:[%s705_s7 + $0x10] sm:$0xff]  }
   0x5   :  { %v529_v5 = vld [vmem:[%s703_s5] sm:$0xff]   ;;  %524 = vset.pattern.permute.xlu0 %v547_v13  ;;  %v538_v17 = vld [vmem:[%s705_s7 + $0x8] sm:$0xff]   ;;  %v540_v19 = vld [vmem:[%s705_s7 + $0x18] sm:$0xff]  }
   0x6   :  { %470 = vmatmul.mubr.msk.bf16.vlgmr.msra.gmra.mrb[0].mxu1 %vm52_vm1, %v527_v3  ;;  %476 = vmatmul.mubr.msk.bf16.vlgmr.msra.gmra.mrb[0].mxu0 %vm52_vm1, %v528_v4  ;;  %v533_v9 = vld [vmem:[%s703_s5 + $0x20] sm:$0xff]   ;;  %v542_v32 = vld [vmem:[%s705_s7 + $0x28] sm:$0xff]   ;;  %v543_v33 = vld [vmem:[%s705_s7 + $0x30] sm:$0xff]  }
   0x7   :  { %480 = vmatpush3.bf16.msra.mxu1 %v529_v5  ;;  %495 = vmatprep.mubr.msk.bf16.mxu1 %vm546_vm0, %v545_v0  ;;  %v258_v14 = vld [vmem:[%s704_s4] sm:$0xff]  ;;  %v544_v34 = vld [vmem:[%s705_s7 + $0x38] sm:$0xff]  }
   0x8   :  { %481 = vmatprep.subr.bf16.mxu1 %v545_v0  ;;  %515 = vmatprep.mubr.msk.bf16.mxu0 %vm546_vm0, %v545_v0  ;;  %v537_v15 = vld [vmem:[%s705_s7] sm:$0xff]  }
   0x9   :  { %262 = vperm.xlu0 %524, %v258_v14   ;;  %500 = vmatpush3.bf16.msra.mxu0 %v537_v15  ;;  %v541_v20 = vld [vmem:[%s705_s7 + $0x20] sm:$0xff]  }
   0xa   :  { %501 = vmatprep.subr.bf16.mxu0 %v545_v0  ;;  %v426_v37 = vld [vmem:[%s706_s6] ss:$0 sm:$0xff] }
   0xb   :  { %482 = vmatpush3.bf16.msra.mxu1 %v530_v6  ;;  %v427_v49 = vld [vmem:[%s707_s8] ss:$0 sm:$0xff] }
   0xc   :  { %483 = vmatprep.subr.bf16.mxu1 %v545_v0 }
   0xd   :  { %267 = vperm.xlu0 %524, %v259_v16   ;;  %502 = vmatpush3.bf16.msra.mxu0 %v538_v17 }
   0xe   :  { %503 = vmatprep.subr.bf16.mxu0 %v545_v0 }
   0xf   :  { %484 = vmatpush3.bf16.msra.mxu1 %v531_v7 }
  0x10   :  { %485 = vmatprep.subr.bf16.mxu1 %v545_v0 }
  0x11   :  { %504 = vmatpush3.bf16.msra.mxu0 %v539_v18 }
  0x12   :  { %505 = vmatprep.subr.bf16.mxu0 %v545_v0 }
  0x13   :  { %486 = vmatpush3.bf16.msra.mxu1 %v532_v8 }
  0x14   :  { %487 = vmatprep.subr.bf16.mxu1 %v545_v0 }
  0x15   :  { %506 = vmatpush3.bf16.msra.mxu0 %v540_v19 }
  0x16   :  { %507 = vmatprep.subr.bf16.mxu0 %v545_v0 }
  0x17   :  { %488 = vmatpush3.bf16.msra.mxu1 %v533_v9 }
  0x18   :  { %489 = vmatprep.subr.bf16.mxu1 %v545_v0 }
  0x19   :  { %508 = vmatpush3.bf16.msra.mxu0 %v541_v20 }
  0x1a   :  { %509 = vmatprep.subr.bf16.mxu0 %v545_v0 }
  0x1b   :  { %490 = vmatpush3.bf16.msra.mxu1 %v534_v10 }
  0x1c   :  { %491 = vmatprep.subr.bf16.mxu1 %v545_v0 }
  0x1d   :  { %510 = vmatpush3.bf16.msra.mxu0 %v542_v32 }
  0x1e   :  { %511 = vmatprep.subr.bf16.mxu0 %v545_v0 }
  0x1f   :  { %492 = vmatpush3.bf16.msra.mxu1 %v535_v11 }
  0x20   :  { %493 = vmatprep.subr.bf16.mxu1 %v545_v0 }
  0x21   :  { %512 = vmatpush3.bf16.msra.mxu0 %v543_v33 }
  0x22   :  { %513 = vmatprep.subr.bf16.mxu0 %v545_v0 }
  0x23   :  { %494 = vmatpush3.bf16.msra.mxu1 %v536_v12 }
  0x25   :  { %514 = vmatpush3.bf16.msra.mxu0 %v544_v34 }
  0x88   :  { %v263_v35 = vpop.permute.xlu0 %262 }
  0x8c   :  { %v268_v40 = vpop.permute.xlu0 %267 }
  0xd9   :  { %v90_v21 = vpop.f32.mrb[0].mxu1  ;;  %v145_v22 = vpop.f32.mrb[0].mxu0 }
  0xda   :  { %v471_v23 = vpop.f32.mrb[1].mxu1  ;;  %v146_v24 = vadd.f32 %v145_v22, %v90_v21  ;;  %v477_v25 = vpop.f32.mrb[1].mxu0 }
  0xdb   :  { %v93_v26 = vpop.f32.mrb[2].mxu1  ;;  %v148_v27 = vpop.f32.mrb[2].mxu0 }
  0xdc   :  { %v472_v28 = vpop.f32.mrb[3].mxu1  ;;  %v149_v29 = vadd.f32 %v148_v27, %v93_v26  ;;  %v478_v30 = vpop.f32.mrb[3].mxu0 }
  0xde   :  { %v152_v31 = vpack.c.bf16 %v149_v29, %v146_v24 }
  0xe0   :  { %496 = vmatmul.mubr.bf16.vlgmr.msra.gmra.mrb[4].mxu1 %v152_v31 }
 0x1b3   :  { %v251_v36 = vpop.f32.mrb[4].mxu1 }
 0x1b4   :  { %v270_v38 = vmul.f32 %v263_v35, %v251_v36  ;;  %v497_v39 = vpop.f32.mrb[5].mxu1 }
 0x1b5   :  { %v254_v41 = vpop.f32.mrb[6].mxu1 }
 0x1b6   :  { %v279_v42 = vadd.f32 %v426_v37, %v270_v38  ;;  %v271_v43 = vmul.f32 %v268_v40, %v254_v41  ;;  %v498_v44 = vpop.f32.mrb[7].mxu1 }
 0x1b8   :  { %v280_v45 = vadd.f32 %v426_v37, %v271_v43  ;;  %v281_v46 = vmax.f32 %v279_v42, 0.0 }
 0x1ba   :  { %v282_v47 = vmax.f32 %v280_v45, 0.0 }
 0x1bc   :  { %v283_v48 = vpack.c.bf16 %v282_v47, %v281_v46 }
 0x1be   :  { %516 = vmatmul.mubr.bf16.vlgmr.msra.gmra.mrb[4].mxu0 %v283_v48 }
 0x291   :  { %v389_v50 = vpop.f32.mrb[4].mxu0 }
 0x292   :  { %v390_v51 = vadd.f32 %v427_v49, %v389_v50  ;;  %v517_v52 = vpop.f32.mrb[5].mxu0 }
 0x293   :  { %v392_v53 = vpop.f32.mrb[6].mxu0 }
 0x294   :  { %v393_v54 = vadd.f32 %v427_v49, %v392_v53  ;;  %v518_v55 = vpop.f32.mrb[7].mxu0  ;;  %v396_v56 = vmax.f32 %v390_v51, 0.0 }
 0x296   :  { %v397_v57 = vmax.f32 %v393_v54, 0.0 }
 0x298   :  { %v443_v58 = vpack.c.bf16 %v397_v57, %v396_v56 }
 0x29a   :  { %444 = vst [vmem:[%s708_s9] sm:$0xff] %v443_v58  }

// kernel: graph_triple_conv_net_forward.4
= control target key start
LH: loop header
LB: loop body
LE: loop exit
PB: predicated region body
PF: predicated region fallthrough
CT: control target
= control target key end

     0   :  { %v412_v0 = vmov 0.0   ;;  %vm413_vm0 = vmmov 0   ;;  %v414_v26 = vmov 0   ;;  %v162_v37 = vlaneseq  ;;  %s532_s1 = inlined_call_operand.vmem [shape: bf16[128,128], index: 1, kind: input, shape index: {}]   ;;  %s533_s3 = inlined_call_operand.vmem [shape: bf16[128,256], index: 3, kind: input, shape index: {}]   ;;  %s534_s0 = inlined_call_operand.vmem [shape: bf16[16,128], index: 0, kind: input, shape index: {}]   ;;  %s535_s2 = inlined_call_operand.vmem [shape: f32[1,128], index: 2, kind: input, shape index: {}]   ;;  %s536_s4 = inlined_call_operand.vmem [shape: f32[1,256], index: 4, kind: input, shape index: {}]   ;;  %s537_s5 = inlined_call_operand.vmem [shape: bf16[16,256], index: 5, kind: output, shape index: {}]  }
   0x1   :  { %356 = vmatprep.subr.bf16.mxu0 %v412_v0  ;;  %v379_v1 = vld [vmem:[%s532_s1] sm:$0xff]   ;;  %372 = vmatprep.mubr.msk.bf16.mxu0 %vm413_vm0, %v412_v0  ;;  %v380_v2 = vld [vmem:[%s532_s1 + $0x8] sm:$0xff]   ;;  %v381_v3 = vld [vmem:[%s532_s1 + $0x10] sm:$0xff]  }
   0x2   :  { %357 = vmatpush3.bf16.msra.mxu0 %v379_v1  ;;  %v382_v4 = vld [vmem:[%s532_s1 + $0x18] sm:$0xff]   ;;  %v388_v5 = vld [vmem:[%s533_s3 + $0x4] ss:$8 sps:$4 sm:$0xff]   ;;  %v390_v6 = vld [vmem:[%s533_s3] ss:$8 sps:$4 sm:$0xff]   ;;  %284 = vmatprep.mubr.bf16.mxu1 %v414_v26  ;;  %v163_v38 = vshrl.u32 %v162_v37, 7 }
   0x3   :  { %358 = vmatprep.subr.bf16.mxu0 %v412_v0  ;;  %252 = vmatprep.subr.bf16.mxu1 %v388_v5  ;;  %v391_v7 = vld [vmem:[%s533_s3 + $0x14] ss:$8 sps:$4 sm:$0xff]   ;;  %v393_v8 = vld [vmem:[%s533_s3 + $0x10] ss:$8 sps:$4 sm:$0xff]   ;;  %v394_v9 = vld [vmem:[%s533_s3 + $0x24] ss:$8 sps:$4 sm:$0xff]  }
   0x4   :  { %253 = vmatpush1.bf16.msra.mxu1 %v390_v6  ;;  %v383_v10 = vld [vmem:[%s532_s1 + $0x20] sm:$0xff]   ;;  %v397_v12 = vld [vmem:[%s533_s3 + $0x34] ss:$8 sps:$4 sm:$0xff]   ;;  %v384_v13 = vld [vmem:[%s532_s1 + $0x28] sm:$0xff]   ;;  %v164_v39 = vsub.s32 0, %v163_v38  ;;  %v168_v41 = vsub.s32 1, %v163_v38 }
   0x5   :  { %254 = vmatprep.subr.bf16.mxu1 %v391_v7  ;;  %v396_v11 = vld [vmem:[%s533_s3 + $0x20] ss:$8 sps:$4 sm:$0xff]   ;;  %v399_v14 = vld [vmem:[%s533_s3 + $0x30] ss:$8 sps:$4 sm:$0xff]   ;;  %v400_v15 = vld [vmem:[%s533_s3 + $0x44] ss:$8 sps:$4 sm:$0xff]  }
   0x6   :  { %359 = vmatpush3.bf16.msra.mxu0 %v380_v2  ;;  %v385_v16 = vld [vmem:[%s532_s1 + $0x30] sm:$0xff]   ;;  %v402_v17 = vld [vmem:[%s533_s3 + $0x40] ss:$8 sps:$4 sm:$0xff]   ;;  %v386_v19 = vld [vmem:[%s532_s1 + $0x38] sm:$0xff]  }
   0x7   :  { %360 = vmatprep.subr.bf16.mxu0 %v412_v0  ;;  %v403_v18 = vld [vmem:[%s533_s3 + $0x54] ss:$8 sps:$4 sm:$0xff]   ;;  %v405_v20 = vld [vmem:[%s533_s3 + $0x50] ss:$8 sps:$4 sm:$0xff]   ;;  %v387_v21 = vld [vmem:[%s534_s0] sm:$0xff]  }
   0x8   :  { %255 = vmatpush1.bf16.msra.mxu1 %v393_v8  ;;  %v406_v22 = vld [vmem:[%s533_s3 + $0x64] ss:$8 sps:$4 sm:$0xff]   ;;  %v408_v23 = vld [vmem:[%s533_s3 + $0x60] ss:$8 sps:$4 sm:$0xff]   ;;  %v409_v24 = vld [vmem:[%s533_s3 + $0x74] ss:$8 sps:$4 sm:$0xff]  }
   0x9   :  { %256 = vmatprep.subr.bf16.mxu1 %v394_v9  ;;  %v411_v25 = vld [vmem:[%s533_s3 + $0x70] ss:$8 sps:$4 sm:$0xff]   ;;  %v317_v27 = vld [vmem:[%s535_s2] ss:$0 sm:$0xff] }
   0xa   :  { %361 = vmatpush3.bf16.msra.mxu0 %v381_v3  ;;  %v160_v40 = vld [vmem:[%s536_s4] sm:$0x3] }
   0xb   :  { %362 = vmatprep.subr.bf16.mxu0 %v412_v0  ;;  %v165_v42 = vrot.slane %v160_v40, %v164_v39  ;;  %v169_v43 = vrot.slane %v160_v40, %v168_v41 }
   0xc   :  { %257 = vmatpush1.bf16.msra.mxu1 %v396_v11 }
   0xd   :  { %258 = vmatprep.subr.bf16.mxu1 %v397_v12 }
   0xe   :  { %363 = vmatpush3.bf16.msra.mxu0 %v382_v4 }
   0xf   :  { %364 = vmatprep.subr.bf16.mxu0 %v412_v0 }
  0x10   :  { %259 = vmatpush1.bf16.msra.mxu1 %v399_v14 }
  0x11   :  { %260 = vmatprep.subr.bf16.mxu1 %v400_v15 }
  0x12   :  { %365 = vmatpush3.bf16.msra.mxu0 %v383_v10 }
  0x13   :  { %366 = vmatprep.subr.bf16.mxu0 %v412_v0 }
  0x14   :  { %261 = vmatpush1.bf16.msra.mxu1 %v402_v17 }
  0x15   :  { %262 = vmatprep.subr.bf16.mxu1 %v403_v18 }
  0x16   :  { %367 = vmatpush3.bf16.msra.mxu0 %v384_v13 }
  0x17   :  { %368 = vmatprep.subr.bf16.mxu0 %v412_v0 }
  0x18   :  { %263 = vmatpush1.bf16.msra.mxu1 %v405_v20 }
  0x19   :  { %264 = vmatprep.subr.bf16.mxu1 %v406_v22 }
  0x1a   :  { %369 = vmatpush3.bf16.msra.mxu0 %v385_v16 }
  0x1b   :  { %370 = vmatprep.subr.bf16.mxu0 %v412_v0 }
  0x1c   :  { %265 = vmatpush1.bf16.msra.mxu1 %v408_v23 }
  0x1d   :  { %266 = vmatprep.subr.bf16.mxu1 %v409_v24 }
  0x1e   :  { %371 = vmatpush3.bf16.msra.mxu0 %v386_v19 }
  0x20   :  { %267 = vmatpush1.bf16.msra.mxu1 %v411_v25 }
  0x21   :  { %373 = vmatmul.mubr.bf16.vlgmr.msra.gmra.mrb[0].mxu0 %v387_v21 }
  0xf4   :  { %v134_v28 = vpop.f32.mrb[0].mxu0 }
  0xf5   :  { %v135_v29 = vadd.f32 %v317_v27, %v134_v28  ;;  %v374_v30 = vpop.f32.mrb[1].mxu0 }
  0xf6   :  { %v137_v31 = vpop.f32.mrb[2].mxu0 }
  0xf7   :  { %v138_v32 = vadd.f32 %v317_v27, %v137_v31  ;;  %v375_v33 = vpop.f32.mrb[3].mxu0  ;;  %v141_v34 = vmax.f32 %v135_v29, 0.0 }
  0xf9   :  { %v142_v35 = vmax.f32 %v138_v32, 0.0 }
  0xfb   :  { %v143_v36 = vpack.c.bf16 %v142_v35, %v141_v34 }
  0xfd   :  { %285 = vmatmul.mubr.bf16.vlgmr.msra.gmra.mrb[0].mxu1 %v143_v36 }
 0x1d0   :  { %v286_v44 = vpop.f32.mrb[0].mxu1 }
 0x1d1   :  { %v287_v45 = vadd.f32 %v286_v44, %v165_v42  ;;  %v288_v46 = vpop.f32.mrb[1].mxu1 }
 0x1d2   :  { %v289_v47 = vadd.f32 %v288_v46, %v169_v43  ;;  %v290_v48 = vpop.f32.mrb[2].mxu1 }
 0x1d3   :  { %v295_v49 = vmax.f32 %v287_v45, 0.0  ;;  %v291_v50 = vadd.f32 %v290_v48, %v165_v42  ;;  %v292_v51 = vpop.f32.mrb[3].mxu1 }
 0x1d4   :  { %v296_v52 = vmax.f32 %v289_v47, 0.0  ;;  %v293_v53 = vadd.f32 %v292_v51, %v169_v43 }
 0x1d5   :  { %v297_v54 = vmax.f32 %v291_v50, 0.0 }
 0x1d6   :  { %v345_v55 = vpack.c.bf16 %v296_v52, %v295_v49  ;;  %v298_v56 = vmax.f32 %v293_v53, 0.0 }
 0x1d8   :  { %311 = vst [vmem:[%s537_s5] sm:$0xff] %v345_v55  ;;  %v346_v57 = vpack.c.bf16 %v298_v56, %v297_v54 }
 0x1da   :  { %312 = vst [vmem:[%s537_s5 + $0x8] sm:$0xff] %v346_v57 }

</bundles_post_ra>
